<compile_context>
chip_gen: v5e
topology: v5e:2x2
jax: 0.10.0
libtpu: 0.0.40
codegen_flags: <defaults>
</compile_context>

<pallas_src>
import functools

import jax
import jax.numpy as jnp
from jax.experimental import pallas as pl
from jax.experimental.pallas import tpu as pltpu


def _shift_kernel(shift_ref, x_ref, o_ref, *, pad):
    """One batch element per grid step.

    shift_ref : SMEM int32 (2*N,) scalar-prefetched; [2b] = sx (width shift),
                [2b+1] = sy (height shift), both in [0, 2*pad].
    x_ref     : VMEM (C, H + 2*pad, W + 2*pad) replicate-padded input slab.
    o_ref     : VMEM (C, H, W) output slab.
    """
    b = pl.program_id(0)
    sx = shift_ref[2 * b]        # shift along width  (lane dim)
    sy = shift_ref[2 * b + 1]    # shift along height (sublane dim)

    c, h, w = o_ref.shape

    # Row crop: dynamic sublane-offset slice of the padded slab (single load).
    rows = x_ref[:, pl.ds(sy, h), :]                      # (C, H, W + 2*pad)

    # Column crop: select among the 2*pad + 1 possible static lane-offset crops,
    # keyed on the prefetched scalar shift. All VPU (compare + select); no
    # gathers, no dynamic lane slicing, no matmuls.
    sx_full = jnp.full((c, h, w), sx, dtype=jnp.int32)    # hoisted broadcast
    out = rows[:, :, 0:w]
    for s in range(1, 2 * pad + 1):
        out = jnp.where(sx_full == s, rows[:, :, s:s + w], out)

    o_ref[...] = out.astype(o_ref.dtype)


def random_shifts_aug(x, shifts, pad):
    """x: (N, C, H, W); shifts: (N, 2) int32 in [0, 2*pad],
    shifts[:, 0] = width shift (sx), shifts[:, 1] = height shift (sy)."""
    n, c, h, w = x.shape
    assert h == w, "RandomShiftsAug requires square images"

    hp, wp = h + 2 * pad, w + 2 * pad
    # Replicate-pad once in the wrapper (== F.pad(x, 'replicate') in the module);
    # the kernel then only moves data (integer crop), no clamping needed.
    xpad = jnp.pad(x, ((0, 0), (0, 0), (pad, pad), (pad, pad)), mode="edge")
    flat_shifts = shifts.astype(jnp.int32).reshape(-1)    # (2*N,) for 1-D SMEM

    kernel = functools.partial(_shift_kernel, pad=pad)

    return pl.pallas_call(
        kernel,
        out_shape=jax.ShapeDtypeStruct((n, c, h, w), x.dtype),
        grid_spec=pltpu.PrefetchScalarGridSpec(
            num_scalar_prefetch=1,
            grid=(n,),
            in_specs=[
                # Full (C, Hp, Wp) padded slab for this batch element.
                pl.BlockSpec((None, c, hp, wp), lambda b, s: (b, 0, 0, 0)),
            ],
            out_specs=pl.BlockSpec((None, c, h, w), lambda b, s: (b, 0, 0, 0)),
        ),
        compiler_params=pltpu.CompilerParams(
            dimension_semantics=("parallel",),
        ),
    )(flat_shifts, xpad)


def _reference(x, shifts, pad):
    """Pure-JAX reference: replicate pad + integer crop (== the PyTorch forward)."""
    n, c, h, w = x.shape
    xpad = jnp.pad(x, ((0, 0), (0, 0), (pad, pad), (pad, pad)), mode="edge")

    def one(xp, s):
        return jax.lax.dynamic_slice(xp, (0, s[1], s[0]), (c, h, w))

    return jax.vmap(one)(xpad, shifts)


if __name__ == "__main__":
    pad = 4
    n, c, h, w = 2, 4, 16, 16

    key = jax.random.PRNGKey(0)
    kx, ks = jax.random.split(key)
    x = jax.random.normal(kx, (n, c, h, w), dtype=jnp.float32)
    shifts = jax.random.randint(ks, (n, 2), 0, 2 * pad + 1, dtype=jnp.int32)

    out = random_shifts_aug(x, shifts, pad)
    out = jax.block_until_ready(out)

    ref = _reference(x, shifts, pad)
    assert out.shape == (n, c, h, w)
    assert jnp.array_equal(out, ref), "Pallas output mismatch vs reference"

    print("KERNEL_OK")
</pallas_src>

<mosaic_0001>
module attributes {stable_mosaic.version = 11 : i64} {
  func.func @_shift_kernel(%arg0: i32, %arg1: memref<4xi32, #tpu.memory_space<smem>>, %arg2: memref<1x4x24x24xf32, #tpu.memory_space<vmem>>, %arg3: memref<1x4x16x16xf32, #tpu.memory_space<vmem>>) attributes {dimension_semantics = [#tpu.dimension_semantics<parallel>], iteration_bounds = array<i64: 2>, scalar_prefetch = 1 : i64, scratch_operands = 0 : i64, tpu.core_type = #tpu.core_type<tc>, window_params = [{transform_indices = @transform_0, window_bounds = array<i64: 1, 4, 24, 24>}, {transform_indices = @transform_1, window_bounds = array<i64: 1, 4, 16, 16>}]} {
    %c2_i32 = arith.constant 2 : i32
    %0 = arith.muli %c2_i32, %arg0 : i32
    %1 = arith.index_cast %0 : i32 to index
    %2 = memref.load %arg1[%1] : memref<4xi32, #tpu.memory_space<smem>>
    %c2_i32_0 = arith.constant 2 : i32
    %3 = arith.muli %c2_i32_0, %arg0 : i32
    %c1_i32 = arith.constant 1 : i32
    %4 = arith.addi %3, %c1_i32 : i32
    %5 = arith.index_cast %4 : i32 to index
    %6 = memref.load %arg1[%5] : memref<4xi32, #tpu.memory_space<smem>>
    %c0 = arith.constant 0 : index
    %c0_1 = arith.constant 0 : index
    %7 = arith.index_cast %6 : i32 to index
    %c0_2 = arith.constant 0 : index
    %8 = vector.load %arg2[%c0, %c0_1, %7, %c0_2] : memref<1x4x24x24xf32, #tpu.memory_space<vmem>>, vector<1x4x16x24xf32>
    %9 = vector.shape_cast %8 : vector<1x4x16x24xf32> to vector<4x16x24xf32>
    %10 = vector.broadcast %2 : i32 to vector<4x16x16xi32>
    %11 = vector.extract_strided_slice %9 {offsets = [0, 0, 0], sizes = [4, 16, 16], strides = [1, 1, 1]} : vector<4x16x24xf32> to vector<4x16x16xf32>
    %c1_i32_3 = arith.constant 1 : i32
    %12 = vector.broadcast %c1_i32_3 : i32 to vector<4x16x16xi32>
    %13 = arith.cmpi eq, %10, %12 : vector<4x16x16xi32>
    %14 = vector.extract_strided_slice %9 {offsets = [0, 0, 1], sizes = [4, 16, 16], strides = [1, 1, 1]} : vector<4x16x24xf32> to vector<4x16x16xf32>
    %15 = arith.select %13, %14, %11 : vector<4x16x16xi1>, vector<4x16x16xf32>
    %c2_i32_4 = arith.constant 2 : i32
    %16 = vector.broadcast %c2_i32_4 : i32 to vector<4x16x16xi32>
    %17 = arith.cmpi eq, %10, %16 : vector<4x16x16xi32>
    %18 = vector.extract_strided_slice %9 {offsets = [0, 0, 2], sizes = [4, 16, 16], strides = [1, 1, 1]} : vector<4x16x24xf32> to vector<4x16x16xf32>
    %19 = arith.select %17, %18, %15 : vector<4x16x16xi1>, vector<4x16x16xf32>
    %c3_i32 = arith.constant 3 : i32
    %20 = vector.broadcast %c3_i32 : i32 to vector<4x16x16xi32>
    %21 = arith.cmpi eq, %10, %20 : vector<4x16x16xi32>
    %22 = vector.extract_strided_slice %9 {offsets = [0, 0, 3], sizes = [4, 16, 16], strides = [1, 1, 1]} : vector<4x16x24xf32> to vector<4x16x16xf32>
    %23 = arith.select %21, %22, %19 : vector<4x16x16xi1>, vector<4x16x16xf32>
    %c4_i32 = arith.constant 4 : i32
    %24 = vector.broadcast %c4_i32 : i32 to vector<4x16x16xi32>
    %25 = arith.cmpi eq, %10, %24 : vector<4x16x16xi32>
    %26 = vector.extract_strided_slice %9 {offsets = [0, 0, 4], sizes = [4, 16, 16], strides = [1, 1, 1]} : vector<4x16x24xf32> to vector<4x16x16xf32>
    %27 = arith.select %25, %26, %23 : vector<4x16x16xi1>, vector<4x16x16xf32>
    %c5_i32 = arith.constant 5 : i32
    %28 = vector.broadcast %c5_i32 : i32 to vector<4x16x16xi32>
    %29 = arith.cmpi eq, %10, %28 : vector<4x16x16xi32>
    %30 = vector.extract_strided_slice %9 {offsets = [0, 0, 5], sizes = [4, 16, 16], strides = [1, 1, 1]} : vector<4x16x24xf32> to vector<4x16x16xf32>
    %31 = arith.select %29, %30, %27 : vector<4x16x16xi1>, vector<4x16x16xf32>
    %c6_i32 = arith.constant 6 : i32
    %32 = vector.broadcast %c6_i32 : i32 to vector<4x16x16xi32>
    %33 = arith.cmpi eq, %10, %32 : vector<4x16x16xi32>
    %34 = vector.extract_strided_slice %9 {offsets = [0, 0, 6], sizes = [4, 16, 16], strides = [1, 1, 1]} : vector<4x16x24xf32> to vector<4x16x16xf32>
    %35 = arith.select %33, %34, %31 : vector<4x16x16xi1>, vector<4x16x16xf32>
    %c7_i32 = arith.constant 7 : i32
    %36 = vector.broadcast %c7_i32 : i32 to vector<4x16x16xi32>
    %37 = arith.cmpi eq, %10, %36 : vector<4x16x16xi32>
    %38 = vector.extract_strided_slice %9 {offsets = [0, 0, 7], sizes = [4, 16, 16], strides = [1, 1, 1]} : vector<4x16x24xf32> to vector<4x16x16xf32>
    %39 = arith.select %37, %38, %35 : vector<4x16x16xi1>, vector<4x16x16xf32>
    %c8_i32 = arith.constant 8 : i32
    %40 = vector.broadcast %c8_i32 : i32 to vector<4x16x16xi32>
    %41 = arith.cmpi eq, %10, %40 : vector<4x16x16xi32>
    %42 = vector.extract_strided_slice %9 {offsets = [0, 0, 8], sizes = [4, 16, 16], strides = [1, 1, 1]} : vector<4x16x24xf32> to vector<4x16x16xf32>
    %43 = arith.select %41, %42, %39 : vector<4x16x16xi1>, vector<4x16x16xf32>
    %c0_5 = arith.constant 0 : index
    %c0_6 = arith.constant 0 : index
    %c0_7 = arith.constant 0 : index
    %c0_8 = arith.constant 0 : index
    %44 = vector.load %arg3[%c0_5, %c0_6, %c0_7, %c0_8] : memref<1x4x16x16xf32, #tpu.memory_space<vmem>>, vector<1x4x16x16xf32>
    %45 = vector.shape_cast %44 : vector<1x4x16x16xf32> to vector<4x16x16xf32>
    %46 = vector.shape_cast %43 : vector<4x16x16xf32> to vector<1x4x16x16xf32>
    tpu.vector_store %arg3[%c0_5, %c0_6, %c0_7, %c0_8], %46 {strides = array<i32>} : memref<1x4x16x16xf32, #tpu.memory_space<vmem>>, vector<1x4x16x16xf32>,
    return
  }
  func.func @transform_0(%arg0: i32, %arg1: memref<4xi32, #tpu.memory_space<smem>>) -> (i32, i32, i32, i32) {
    %c0_i32 = arith.constant 0 : i32
    %c0_i32_0 = arith.constant 0 : i32
    %c0_i32_1 = arith.constant 0 : i32
    %c0_i32_2 = arith.constant 0 : i32
    return %arg0, %c0_i32, %c0_i32_0, %c0_i32_1 : i32, i32, i32, i32
  }
  func.func @transform_1(%arg0: i32, %arg1: memref<4xi32, #tpu.memory_space<smem>>) -> (i32, i32, i32, i32) {
    %c0_i32 = arith.constant 0 : i32
    %c0_i32_0 = arith.constant 0 : i32
    %c0_i32_1 = arith.constant 0 : i32
    %c0_i32_2 = arith.constant 0 : i32
    return %arg0, %c0_i32, %c0_i32_0, %c0_i32_1 : i32, i32, i32, i32
  }
}

</mosaic_0001>

<bundles_post_ra>
// kernel: tpu_custom_call.1
= control target key start
LH: loop header
LB: loop body
LE: loop exit
PB: predicated region body
PF: predicated region fallthrough
CT: control target
= control target key end

     0   :  { %s800_s12 = smov [#allocation3]   ;;  %s1242_s0 = inlined_call_operand.hbm [shape: s32[4], index: 0, kind: input, shape index: {}]   ;;  %s1243_s1 = inlined_call_operand.hbm [shape: f32[2,4,24,24], index: 1, kind: input, shape index: {}]   ;;  %s1244_s2 = inlined_call_operand.hbm [shape: f32[2,4,16,16], index: 2, kind: output, shape index: {}]  }
   0x1   :  { %s8_s11 = sshll.u32 %s1242_s0, 4  ;;  %s9_s11 = int_to_ptr.hbm [resolvable:$true] %s8_s11 }
   0x2   :  { %11 = dma.hbm_to_smem %s9_s11, 16, %s800_s12, [#allocation2] }
   0x3   :  { %774 = dma.done.wait [#allocation2], 16 }
   0x4   :  { %775 = vsyncadd [#allocation2], 4294967280 }
   0x5   :  { %14 = sfence }
   0x6   :  { %15 = vsyncpa [#allocation5], 0 }
   0x7   :  { %17 = vsyncpa [#allocation5 + $0x1], 0 }
   0x8   :  { %18 = vsyncpa [#allocation6], 0 }
   0x9   :  { %20 = vsyncpa [#allocation6 + $0x1], 0  ;;  %s825_s13 = smov 0   ;;  %s827_s14 = smov 0  }
   0xa   :  { %s829_s15 = smov 0   ;;  %s831_s16 = smov 0  }
   0xb LB: > { %s846_s0 = sadd.s32 4294967295, %s798_s16   ;;  %s619_s17 = sadd.s32 4294967294, %s798_s16   ;;  %s798_s16 = sphi %s831_s16, %s1252_s16   ;;  %s794_s15 = sphi %s829_s15, %s1251_s15   ;;  %s790_s14 = sphi %s827_s14, %s1250_s14   ;;  %s786_s13 = sphi %s825_s13, %s1249_s13  }
   0xc   : > { %s850_s18 = sadd.s32 1, %s798_s16   ;;  %s33_s19 = sadd.s32 1, %s794_s15 }
   0xd   : > { %s30_s20 = ssub.s32 %s798_s16, %s850_s18  ;;  %p40_p0 = scmp.ne.s32.totalorder %s794_s15, %s790_s14 }
   0xe   : > { %p31_p1 = scmp.eq.s32.totalorder %s30_s20, 0  ;;  %p41_p2 = scmp.eq.s32.totalorder %s798_s16, 0 }
   0xf   : > { %p46_p3 = scmp.ne.s32.totalorder %s790_s14, %s786_s13  ;;  %p47_p4 = scmp.eq.s32.totalorder %s846_s0, 0 }
  0x10   : > { %s862_s21 = scalar_select %p31_p1, %s794_s15, %s33_s19  }
  0x11   : > { %p42_p5 = por %p41_p2, %p40_p0  ;;  %p864_p6 = por %p47_p4, %p46_p3 }
  0x12   : > { %p70_p7 = scmp.eq.s32.totalorder %s846_s0, 1  ;;  %p76_p8 = scmp.eq.s32.totalorder %s619_s17, 1 }
  0x13   : > { %p621_p9 = scmp.ge.s32.totalorder %s798_s16, 2  ;;  %p647_p10 = scmp.lt.s32.totalorder %s798_s16, 2 }
  0x14   : > { %p871_p11 = por %p70_p7, %p40_p0  ;;  %p875_p12 = por %p76_p8, %p46_p3 }
  0x15   : > { %s96_s25 = sand.u32 1, %s794_s15   ;;  %s633_s26 = smul.u32 96, %s798_s16 }
  0x16   : > { %s632_s27 = smul.u32 96, %s96_s25  ;;  %p884_p13 = pnand %p647_p10, %p42_p5 }
  0x17   : > { %s105_s30 = scalar_lea.hbm %s1243_s1, %s633_s26  ;;  %s97_s7 = scalar_lea.sflag [#allocation5], %s96_s25 }
  0x18   : > { %s106_s4 = sshll.u32 %s105_s30, 4  ;;  %s100_s5 = scalar_lea.vmem [#allocation4], %s632_s27  ;;  %s107_s4 = int_to_ptr.hbm [resolvable:$true] %s106_s4 }
  0x19   : > { %s108_s6 = sshll.u32 %s100_s5, 4  ;;  %s700_s8 = sshra.s32 %s107_s4, 4  ;;  %s109_s6 = int_to_ptr.vmem [resolvable:$true] %s108_s6  ;;  %s701_s8 = int_to_ptr.hbm [resolvable:$true] %s700_s8 }
  0x1a   : > { %s702_s9 = scalar_lea.hbm %s701_s8, 96  ;;  %p704_p1 = pneg %p884_p13 }
  0x1b   : > { %p703_p0 = scmp.ne.s32.totalorder %s701_s8, %s702_s9  ;;  %s707_s12 = scalar_lea.hbm %s1243_s1, 192 }
  0x1c   : > { %p708_p4 = scmp.lt.s32.totalorder %s701_s8, %s1243_s1  ;;  %p709_p5 = scmp.lt.s32.totalorder %s707_s12, %s702_s9 }
  0x1d   : > { %p705_p2 = pnand %p704_p1, %p703_p0 }
  0x1e   : > { %p710_p7 = por %p709_p5, %p708_p4 }
  0x1f   : > { %p706_p3 = pneg %p705_p2 }
  0x21   : > { %p711_p8 = pnand %p710_p7, %p706_p3 }
  0x23   : > { %714 = shalt.err (!%p711_p8)
}
  0x24   : > { %s801_s20 = smov 128   ;;  %s802_s25 = smov 8  }
  0x25   : > { %642 = dma.hbm_to_vmem [thread:$0]  (!%p884_p13), %s107_s4, 1536, %s109_s6, %s97_s7, %s801_s20, %s801_s20, %s802_s25  }
  0x26   : > { %p623_p10 = scmp.ge.s32.totalorder %s798_s16, 1  ;;  %p116_p0 = scmp.lt.s32.totalorder %s798_s16, 3 }
  0x28   : > { %p117_p1 = pnand %p623_p10, %p116_p0 }
  0x29   : > { %s901_s26 = sand.u32 (!%p117_p1), 1, %s790_s14  }
  0x2a   : > { %120 = sbr.rel (%p117_p1) target bundleno = 1065 (0x429), region = 24  ;;  %s123_s28 = scalar_lea.sflag (!%p117_p1), [#allocation5], %s901_s26 }
  0x2b   : > { %s634_s27 = smul.u32 (!%p117_p1), 96, %s901_s26 }
  0x2d   : > { %s126_s29 = scalar_lea.vmem (!%p117_p1), [#allocation4], %s634_s27 }
  0x2f   : > { %777 = dma.done.wait (%p864_p6), %s123_s28, 1536  }
  0x30   : > { %779 = vsyncadd (%p864_p6), %s123_s28, 4294965760  ;;  %s625_s30 = sshll.u32 %s846_s0, 1  ;;  %s803_s6 = smov 1   ;;  %vm520_vm8 = vcmask 130048  }
  0x31   : > { %s148_s3 = sadd.s32 1, %s625_s30  ;;  %s147_s22 = sld [smem:[#allocation3 + %s625_s30]] }
  0x32   : > { %s149_s4 = sld [smem:[#allocation3 + %s148_s3]]  ;;  %s804_s7 = smov 120  }
  0x33   : > { %s624_s8 = sshll.u32 %s901_s26, 6  ;;  %s631_s10 = sshll.u32 %s846_s0, 6 }
  0x34   : > { %s145_s9 = scalar_lea.vmem [#allocation7], %s624_s8  ;;  %s541_s17 = scalar_lea.hbm %s1244_s2, %s631_s10 }
  0x35   : > { %s542_s19 = sshll.u32 %s145_s9, 4  ;;  %s544_s20 = sshll.u32 %s541_s17, 4  ;;  %s543_s19 = int_to_ptr.vmem [resolvable:$true] %s542_s19  ;;  %s545_s20 = int_to_ptr.hbm [resolvable:$true] %s544_s20 }
  0x36   : > { %s530_s25 = scalar_lea.sflag [#allocation6], %s901_s26  ;;  %s744_s0 = sshra.s32 %s545_s20, 4  ;;  %s745_s0 = int_to_ptr.hbm [resolvable:$true] %s744_s0 }
  0x37   : > { %v942_v9 = vstv %s147_s22  ;;  %s746_s27 = scalar_lea.hbm %s745_s0, 64  ;;  %s750_s30 = scalar_lea.hbm %s1244_s2, 128 }
  0x38   : > { %s150_s5 = scalar_lea.vmem %s126_s29, %s149_s4 [#allocation4]  ;;  %vm160_vm0 = vcmp.eq.s32.totalorder %v942_v9, 1  ;;  %vm201_vm1 = vcmp.eq.s32.totalorder %v942_v9, 2  ;;  %vm242_vm2 = vcmp.eq.s32.totalorder %v942_v9, 3  ;;  %vm283_vm3 = vcmp.eq.s32.totalorder %v942_v9, 4  ;;  %p747_p6 = scmp.ne.s32.totalorder %s745_s0, %s746_s27 }
  0x39   : > { %v910_v0 = vld [vmem:[%s150_s5 + $0x18] sm:$0xff]  ;;  %v912_v1 = vld [vmem:[%s150_s5] sm:$0xff]  ;;  %v918_v2 = vld [vmem:[%s150_s5 + $0x30] sm:$0xff]  ;;  %vm324_vm4 = vcmp.eq.s32.totalorder %v942_v9, 5  ;;  %vm365_vm5 = vcmp.eq.s32.totalorder %v942_v9, 6  ;;  %vm406_vm6 = vcmp.eq.s32.totalorder %v942_v9, 7  ;;  %p751_p3 = scmp.lt.s32.totalorder %s745_s0, %s1244_s2  ;;  %p752_p4 = scmp.lt.s32.totalorder %s750_s30, %s746_s27 }
  0x3a   : > { %173 = vrot.lane.b32.xlu1 %v910_v0, %s803_s6  ;;  %169 = vrot.lane.b32.xlu0 %v912_v1, %s803_s6  ;;  %v922_v3 = vld [vmem:[%s150_s5 + $0x8] sm:$0xff]  ;;  %v924_v4 = vld [vmem:[%s150_s5 + $0x20] sm:$0xff]  ;;  %vm447_vm7 = vcmp.eq.s32.totalorder %v942_v9, 8  ;;  %p748_p13 = pnand %p747_p6, %p871_p11 }
  0x3b   : > { %177 = vrot.lane.b32.xlu2 %v918_v2, %s803_s6  ;;  %v926_v5 = vld [vmem:[%s150_s5 + $0x38] sm:$0xff]  ;;  %v934_v6 = vld [vmem:[%s150_s5 + $0x50] sm:$0xff]  ;;  %v936_v7 = vld [vmem:[%s150_s5 + $0x48] sm:$0xff]  ;;  %p753_p5 = por %p752_p4, %p751_p3 }
  0x3c   : > { %p749_p2 = pneg %p748_p13 }
  0x3e   : > { %p754_p7 = pnand %p753_p5, %p749_p2 }
  0x42   : > { %171 = vrot.lane.b32.xlu0 %v922_v3, %s803_s6  ;;  %175 = vrot.lane.b32.xlu1 %v924_v4, %s803_s6 }
  0x43   : > { %179 = vrot.lane.b32.xlu2 %v926_v5, %s803_s6 }
  0x4a   : > { %183 = vrot.lane.b32.xlu1 %v934_v6, %s803_s6  ;;  %181 = vrot.lane.b32.xlu0 %v936_v7, %s803_s6 }
  0x95   : > { %v178_v8 = vpop.permute.xlu2 %177 }
  0x96   : > { %v197_v21 = vsel %vm160_vm0, %v918_v2, %v178_v8 }
  0x9d   : > { %v180_v14 = vpop.permute.xlu2 %179 }
  0x9e   : > { %v198_v15 = vsel %vm160_vm0, %v926_v5, %v180_v14 }
  0xac   : > { %v174_v10 = vpop.permute.xlu1 %173  ;;  %v170_v11 = vpop.permute.xlu0 %169 }
  0xad   : > { %v195_v12 = vsel %vm160_vm0, %v910_v0, %v174_v10  ;;  %v193_v13 = vsel %vm160_vm0, %v912_v1, %v170_v11 }
  0xae   : > { %214 = vrot.lane.b32.xlu1 %v195_v12, %s803_s6  ;;  %210 = vrot.lane.b32.xlu2 %v193_v13, %s803_s6 }
  0xb4   : > { %v172_v16 = vpop.permute.xlu0 %171  ;;  %v176_v17 = vpop.permute.xlu1 %175 }
  0xb5   : > { %v194_v18 = vsel %vm160_vm0, %v922_v3, %v172_v16  ;;  %v196_v19 = vsel %vm160_vm0, %v924_v4, %v176_v17 }
  0xb6   : > { %220 = vrot.lane.b32.xlu1 %v198_v15, %s803_s6  ;;  %212 = vrot.lane.b32.xlu0 %v194_v18, %s803_s6 }
  0xb7   : > { %216 = vrot.lane.b32.xlu2 %v196_v19, %s803_s6 }
  0xbc   : > { %v182_v20 = vpop.permute.xlu0 %181  ;;  %v184_v23 = vpop.permute.xlu1 %183 }
  0xbd   : > { %v199_v22 = vsel %vm160_vm0, %v936_v7, %v182_v20  ;;  %v200_v24 = vsel %vm160_vm0, %v934_v6, %v184_v23 }
  0xbe   : > { %218 = vrot.lane.b32.xlu0 %v197_v21, %s803_s6 }
  0xbf   : > { %222 = vrot.lane.b32.xlu2 %v199_v22, %s803_s6 }
  0xc6   : > { %224 = vrot.lane.b32.xlu0 %v200_v24, %s803_s6 }
 0x108   : > { %v211_v25 = vpop.permute.xlu2 %210 }
 0x109   : > { %v234_v26 = vsel %vm201_vm1, %v912_v1, %v211_v25 }
 0x10a   : > { %251 = vrot.lane.b32.xlu1 %v234_v26, %s803_s6 }
 0x111   : > { %v217_v27 = vpop.permute.xlu2 %216 }
 0x112   : > { %v237_v28 = vsel %vm201_vm1, %v924_v4, %v217_v27 }
 0x113   : > { %257 = vrot.lane.b32.xlu1 %v237_v28, %s803_s6 }
 0x119   : > { %v223_v29 = vpop.permute.xlu2 %222 }
 0x11a   : > { %v240_v30 = vsel %vm201_vm1, %v936_v7, %v223_v29 }
 0x11b   : > { %263 = vrot.lane.b32.xlu1 %v240_v30, %s803_s6 }
 0x120   : > { %v215_v31 = vpop.permute.xlu1 %214 }
 0x121   : > { %v236_v32 = vsel %vm201_vm1, %v910_v0, %v215_v31 }
 0x122   : > { %255 = vrot.lane.b32.xlu0 %v236_v32, %s803_s6 }
 0x128   : > { %v221_v33 = vpop.permute.xlu1 %220  ;;  %v213_v34 = vpop.permute.xlu0 %212 }
 0x129   : > { %v239_v35 = vsel %vm201_vm1, %v926_v5, %v221_v33  ;;  %v235_v36 = vsel %vm201_vm1, %v922_v3, %v213_v34 }
 0x12a   : > { %261 = vrot.lane.b32.xlu0 %v239_v35, %s803_s6  ;;  %253 = vrot.lane.b32.xlu2 %v235_v36, %s803_s6 }
 0x130   : > { %v219_v37 = vpop.permute.xlu0 %218 }
 0x131   : > { %v238_v38 = vsel %vm201_vm1, %v918_v2, %v219_v37 }
 0x132   : > { %259 = vrot.lane.b32.xlu2 %v238_v38, %s803_s6 }
 0x138   : > { %v225_v39 = vpop.permute.xlu0 %224 }
 0x139   : > { %v241_v40 = vsel %vm201_vm1, %v934_v6, %v225_v39 }
 0x13a   : > { %265 = vrot.lane.b32.xlu2 %v241_v40, %s803_s6 }
 0x17c   : > { %v252_v41 = vpop.permute.xlu1 %251 }
 0x17d   : > { %v275_v42 = vsel %vm242_vm2, %v912_v1, %v252_v41 }
 0x17e   : > { %292 = vrot.lane.b32.xlu0 %v275_v42, %s803_s6 }
 0x184   : > { %v254_v43 = vpop.permute.xlu2 %253 }
 0x185   : > { %v276_v44 = vsel %vm242_vm2, %v922_v3, %v254_v43  ;;  %v258_v45 = vpop.permute.xlu1 %257 }
 0x186   : > { %294 = vrot.lane.b32.xlu1 %v276_v44, %s803_s6  ;;  %v278_v46 = vsel %vm242_vm2, %v924_v4, %v258_v45 }
 0x187   : > { %298 = vrot.lane.b32.xlu0 %v278_v46, %s803_s6 }
 0x18c   : > { %v260_v47 = vpop.permute.xlu2 %259 }
 0x18d   : > { %v279_v48 = vsel %vm242_vm2, %v918_v2, %v260_v47  ;;  %v264_v49 = vpop.permute.xlu1 %263 }
 0x18e   : > { %300 = vrot.lane.b32.xlu1 %v279_v48, %s803_s6  ;;  %v281_v50 = vsel %vm242_vm2, %v936_v7, %v264_v49 }
 0x18f   : > { %304 = vrot.lane.b32.xlu0 %v281_v50, %s803_s6 }
 0x194   : > { %v256_v51 = vpop.permute.xlu0 %255  ;;  %v266_v52 = vpop.permute.xlu2 %265 }
 0x195   : > { %v277_v53 = vsel %vm242_vm2, %v910_v0, %v256_v51  ;;  %v282_v54 = vsel %vm242_vm2, %v934_v6, %v266_v52 }
 0x196   : > { %296 = vrot.lane.b32.xlu2 %v277_v53, %s803_s6  ;;  %306 = vrot.lane.b32.xlu1 %v282_v54, %s803_s6 }
 0x19c   : > { %v262_v55 = vpop.permute.xlu0 %261 }
 0x19d   : > { %v280_v56 = vsel %vm242_vm2, %v926_v5, %v262_v55 }
 0x19e   : > { %302 = vrot.lane.b32.xlu2 %v280_v56, %s803_s6 }
 0x1f0   : > { %v297_v57 = vpop.permute.xlu2 %296  ;;  %v293_v58 = vpop.permute.xlu0 %292 }
 0x1f1   : > { %v318_v59 = vsel %vm283_vm3, %v910_v0, %v297_v57  ;;  %v316_v60 = vsel %vm283_vm3, %v912_v1, %v293_v58 }
 0x1f2   : > { %337 = vrot.lane.b32.xlu1 %v318_v59, %s803_s6  ;;  %333 = vrot.lane.b32.xlu2 %v316_v60, %s803_s6 }
 0x1f8   : > { %v295_v61 = vpop.permute.xlu1 %294  ;;  %v303_v62 = vpop.permute.xlu2 %302 }
 0x1f9   : > { %v317_v63 = vsel %vm283_vm3, %v922_v3, %v295_v61  ;;  %v321_v8 = vsel %vm283_vm3, %v926_v5, %v303_v62  ;;  %v299_v10 = vpop.permute.xlu0 %298 }
 0x1fa   : > { %335 = vrot.lane.b32.xlu0 %v317_v63, %s803_s6  ;;  %343 = vrot.lane.b32.xlu1 %v321_v8, %s803_s6  ;;  %v319_v11 = vsel %vm283_vm3, %v924_v4, %v299_v10 }
 0x1fb   : > { %339 = vrot.lane.b32.xlu2 %v319_v11, %s803_s6 }
 0x200   : > { %v301_v12 = vpop.permute.xlu1 %300 }
 0x201   : > { %v320_v13 = vsel %vm283_vm3, %v918_v2, %v301_v12  ;;  %v305_v14 = vpop.permute.xlu0 %304 }
 0x202   : > { %341 = vrot.lane.b32.xlu0 %v320_v13, %s803_s6  ;;  %v322_v15 = vsel %vm283_vm3, %v936_v7, %v305_v14 }
 0x203   : > { %345 = vrot.lane.b32.xlu2 %v322_v15, %s803_s6 }
 0x208   : > { %v307_v16 = vpop.permute.xlu1 %306 }
 0x209   : > { %v323_v17 = vsel %vm283_vm3, %v934_v6, %v307_v16 }
 0x20a   : > { %347 = vrot.lane.b32.xlu0 %v323_v17, %s803_s6 }
 0x24c   : > { %v334_v18 = vpop.permute.xlu2 %333 }
 0x24d   : > { %v357_v19 = vsel %vm324_vm4, %v912_v1, %v334_v18 }
 0x24e   : > { %374 = vrot.lane.b32.xlu1 %v357_v19, %s803_s6 }
 0x255   : > { %v340_v20 = vpop.permute.xlu2 %339 }
 0x256   : > { %v360_v21 = vsel %vm324_vm4, %v924_v4, %v340_v20 }
 0x257   : > { %380 = vrot.lane.b32.xlu1 %v360_v21, %s803_s6 }
 0x25d   : > { %v346_v22 = vpop.permute.xlu2 %345 }
 0x25e   : > { %v363_v23 = vsel %vm324_vm4, %v936_v7, %v346_v22 }
 0x25f   : > { %386 = vrot.lane.b32.xlu1 %v363_v23, %s803_s6 }
 0x264   : > { %v338_v24 = vpop.permute.xlu1 %337 }
 0x265   : > { %v359_v25 = vsel %vm324_vm4, %v910_v0, %v338_v24 }
 0x266   : > { %378 = vrot.lane.b32.xlu0 %v359_v25, %s803_s6 }
 0x26c   : > { %v336_v26 = vpop.permute.xlu0 %335  ;;  %v344_v27 = vpop.permute.xlu1 %343 }
 0x26d   : > { %v358_v28 = vsel %vm324_vm4, %v922_v3, %v336_v26  ;;  %v362_v29 = vsel %vm324_vm4, %v926_v5, %v344_v27 }
 0x26e   : > { %376 = vrot.lane.b32.xlu2 %v358_v28, %s803_s6  ;;  %384 = vrot.lane.b32.xlu0 %v362_v29, %s803_s6 }
 0x274   : > { %v342_v30 = vpop.permute.xlu0 %341 }
 0x275   : > { %v361_v31 = vsel %vm324_vm4, %v918_v2, %v342_v30 }
 0x276   : > { %382 = vrot.lane.b32.xlu2 %v361_v31, %s803_s6 }
 0x27c   : > { %v348_v32 = vpop.permute.xlu0 %347 }
 0x27d   : > { %v364_v33 = vsel %vm324_vm4, %v934_v6, %v348_v32 }
 0x27e   : > { %388 = vrot.lane.b32.xlu2 %v364_v33, %s803_s6 }
 0x2c0   : > { %v375_v34 = vpop.permute.xlu1 %374 }
 0x2c1   : > { %v398_v35 = vsel %vm365_vm5, %v912_v1, %v375_v34 }
 0x2c2   : > { %415 = vrot.lane.b32.xlu0 %v398_v35, %s803_s6 }
 0x2c8   : > { %v377_v36 = vpop.permute.xlu2 %376 }
 0x2c9   : > { %v399_v37 = vsel %vm365_vm5, %v922_v3, %v377_v36  ;;  %v381_v38 = vpop.permute.xlu1 %380 }
 0x2ca   : > { %417 = vrot.lane.b32.xlu1 %v399_v37, %s803_s6  ;;  %v401_v39 = vsel %vm365_vm5, %v924_v4, %v381_v38 }
 0x2cb   : > { %421 = vrot.lane.b32.xlu0 %v401_v39, %s803_s6 }
 0x2d0   : > { %v383_v40 = vpop.permute.xlu2 %382 }
 0x2d1   : > { %v402_v41 = vsel %vm365_vm5, %v918_v2, %v383_v40  ;;  %v387_v42 = vpop.permute.xlu1 %386 }
 0x2d2   : > { %423 = vrot.lane.b32.xlu1 %v402_v41, %s803_s6  ;;  %v404_v43 = vsel %vm365_vm5, %v936_v7, %v387_v42 }
 0x2d3   : > { %427 = vrot.lane.b32.xlu0 %v404_v43, %s803_s6 }
 0x2d8   : > { %v379_v44 = vpop.permute.xlu0 %378  ;;  %v389_v45 = vpop.permute.xlu2 %388 }
 0x2d9   : > { %v400_v46 = vsel %vm365_vm5, %v910_v0, %v379_v44  ;;  %v405_v47 = vsel %vm365_vm5, %v934_v6, %v389_v45 }
 0x2da   : > { %419 = vrot.lane.b32.xlu2 %v400_v46, %s803_s6  ;;  %429 = vrot.lane.b32.xlu1 %v405_v47, %s803_s6 }
 0x2e0   : > { %v385_v48 = vpop.permute.xlu0 %384 }
 0x2e1   : > { %v403_v49 = vsel %vm365_vm5, %v926_v5, %v385_v48 }
 0x2e2   : > { %425 = vrot.lane.b32.xlu2 %v403_v49, %s803_s6 }
 0x334   : > { %v420_v50 = vpop.permute.xlu2 %419  ;;  %v416_v51 = vpop.permute.xlu0 %415 }
 0x335   : > { %v441_v52 = vsel %vm406_vm6, %v910_v0, %v420_v50  ;;  %v439_v53 = vsel %vm406_vm6, %v912_v1, %v416_v51 }
 0x336   : > { %460 = vrot.lane.b32.xlu1 %v441_v52, %s803_s6  ;;  %456 = vrot.lane.b32.xlu2 %v439_v53, %s803_s6 }
 0x33c   : > { %v418_v54 = vpop.permute.xlu1 %417  ;;  %v426_v55 = vpop.permute.xlu2 %425 }
 0x33d   : > { %v440_v56 = vsel %vm406_vm6, %v922_v3, %v418_v54  ;;  %v444_v57 = vsel %vm406_vm6, %v926_v5, %v426_v55  ;;  %v422_v58 = vpop.permute.xlu0 %421 }
 0x33e   : > { %458 = vrot.lane.b32.xlu0 %v440_v56, %s803_s6  ;;  %466 = vrot.lane.b32.xlu1 %v444_v57, %s803_s6  ;;  %v442_v59 = vsel %vm406_vm6, %v924_v4, %v422_v58 }
 0x33f   : > { %462 = vrot.lane.b32.xlu2 %v442_v59, %s803_s6 }
 0x344   : > { %v424_v60 = vpop.permute.xlu1 %423 }
 0x345   : > { %v443_v61 = vsel %vm406_vm6, %v918_v2, %v424_v60  ;;  %v428_v62 = vpop.permute.xlu0 %427 }
 0x346   : > { %464 = vrot.lane.b32.xlu0 %v443_v61, %s803_s6  ;;  %v445_v63 = vsel %vm406_vm6, %v936_v7, %v428_v62 }
 0x347   : > { %468 = vrot.lane.b32.xlu2 %v445_v63, %s803_s6 }
 0x34c   : > { %v430_v8 = vpop.permute.xlu1 %429 }
 0x34d   : > { %v446_v10 = vsel %vm406_vm6, %v934_v6, %v430_v8 }
 0x34e   : > { %470 = vrot.lane.b32.xlu0 %v446_v10, %s803_s6 }
 0x390   : > { %v457_v11 = vpop.permute.xlu2 %456 }
 0x391   : > { %v480_v12 = vsel %vm447_vm7, %v912_v1, %v457_v11 }
 0x392   : > { %496 = vrot.lane.b32.xlu1 %v480_v12, %s804_s7 }
 0x399   : > { %v463_v13 = vpop.permute.xlu2 %462 }
 0x39a   : > { %v483_v14 = vsel %vm447_vm7, %v924_v4, %v463_v13 }
 0x39b   : > { %502 = vrot.lane.b32.xlu1 %v483_v14, %s804_s7 }
 0x3a1   : > { %v469_v15 = vpop.permute.xlu2 %468 }
 0x3a2   : > { %v486_v16 = vsel %vm447_vm7, %v936_v7, %v469_v15 }
 0x3a3   : > { %508 = vrot.lane.b32.xlu1 %v486_v16, %s804_s7 }
 0x3a8   : > { %v461_v17 = vpop.permute.xlu1 %460 }
 0x3a9   : > { %v482_v1 = vsel %vm447_vm7, %v910_v0, %v461_v17 }
 0x3aa   : > { %500 = vrot.lane.b32.xlu0 %v482_v1, %s804_s7 }
 0x3b0   : > { %v459_v18 = vpop.permute.xlu0 %458  ;;  %v467_v19 = vpop.permute.xlu1 %466 }
 0x3b1   : > { %v481_v4 = vsel %vm447_vm7, %v922_v3, %v459_v18  ;;  %v485_v20 = vsel %vm447_vm7, %v926_v5, %v467_v19 }
 0x3b2   : > { %498 = vrot.lane.b32.xlu2 %v481_v4, %s804_s7  ;;  %506 = vrot.lane.b32.xlu0 %v485_v20, %s804_s7 }
 0x3b8   : > { %v465_v7 = vpop.permute.xlu0 %464 }
 0x3b9   : > { %v484_v21 = vsel %vm447_vm7, %v918_v2, %v465_v7 }
 0x3ba   : > { %504 = vrot.lane.b32.xlu2 %v484_v21, %s804_s7 }
 0x3c0   : > { %v471_v0 = vpop.permute.xlu0 %470 }
 0x3c1   : > { %v487_v22 = vsel %vm447_vm7, %v934_v6, %v471_v0 }
 0x3c2   : > { %510 = vrot.lane.b32.xlu2 %v487_v22, %s804_s7 }
 0x404   : > { %v497_v3 = vpop.permute.xlu1 %496 }
 0x405   : > { %521 = vst.msk [vmem:[%s145_s9] sm:$0xff] %vm520_vm8, %v497_v3 }
 0x40c   : > { %v499_v5 = vpop.permute.xlu2 %498 }
 0x40d   : > { %522 = vst.msk [vmem:[%s145_s9 + $0x8] sm:$0xff] %vm520_vm8, %v499_v5  ;;  %v503_v23 = vpop.permute.xlu1 %502 }
 0x40e   : > { %524 = vst.msk [vmem:[%s145_s9 + $0x18] sm:$0xff] %vm520_vm8, %v503_v23 }
 0x414   : > { %v505_v2 = vpop.permute.xlu2 %504 }
 0x415   : > { %525 = vst.msk [vmem:[%s145_s9 + $0x20] sm:$0xff] %vm520_vm8, %v505_v2  ;;  %v509_v9 = vpop.permute.xlu1 %508 }
 0x416   : > { %527 = vst.msk [vmem:[%s145_s9 + $0x30] sm:$0xff] %vm520_vm8, %v509_v9 }
 0x41c   : > { %v501_v6 = vpop.permute.xlu0 %500  ;;  %v511_v24 = vpop.permute.xlu2 %510 }
 0x41d   : > { %523 = vst.msk [vmem:[%s145_s9 + $0x10] sm:$0xff] %vm520_vm8, %v501_v6 }
 0x41e   : > { %528 = vst.msk [vmem:[%s145_s9 + $0x38] sm:$0xff] %vm520_vm8, %v511_v24 }
 0x424   : > { %v507_v25 = vpop.permute.xlu0 %506 }
 0x425   : > { %526 = vst.msk [vmem:[%s145_s9 + $0x28] sm:$0xff] %vm520_vm8, %v507_v25 }
 0x426   : > { %757 = shalt.err (!%p754_p7)
}
 0x427   : > { %s805_s26 = smov 128   ;;  %s806_s5 = smov 8  }
 0x428   : > { %637 = dma.vmem_to_hbm [thread:$0]  (%p871_p11), %s543_s19, 1024, %s545_s20, %s530_s25, %s805_s26, %s805_s26, %s806_s5  }
 0x429 PF: > { %s559_s6 = sand.u32 1, %s786_s13   ;;  %p644_p8 = pnand %p621_p9, %p875_p12 }
 0x42a   : > { %s560_s22 = scalar_lea.sflag [#allocation6], %s559_s6 }
 0x42b   : > { %p645_p10 = pneg %p644_p8 }
 0x42d   : > { %781 = dma.done.wait (%p645_p10), %s560_s22, 1024  }
 0x42e   : > { %783 = vsyncadd (%p645_p10), %s560_s22, 4294966272  ;;  %p23_p0 = scmp.ge.s32.totalorder %s850_s18, 4   ;;  %s1249_s13 = smov %s790_s14 }
 0x42f   : > { %s1250_s14 = smov %s794_s15  ;;  %s1251_s15 = smov %s862_s21 }
 0x430   : > { %s1252_s16 = smov %s850_s18  ;;  %25 = sbr.rel (!%p23_p0) target bundleno = 11 (0xb), region = 70 }
 0x435   :  { %566 = vsyncpa [#allocation5], 1 }
 0x436   :  { %568 = vsyncpa [#allocation5 + $0x1], 1 }
 0x437   :  { %569 = vsyncpa [#allocation6], 1 }
 0x438   :  { %571 = vsyncpa [#allocation6 + $0x1], 1 }

</bundles_post_ra>
